<compile_context>
chip_gen: v6e
topology: v6e:2x2x1
jax: 0.10.0
libtpu: 0.0.40
codegen_flags: <defaults>
</compile_context>

<pallas_src>
import jax
import jax.numpy as jnp
from jax.experimental import pallas as pl
from jax.experimental.pallas import tpu as pltpu


def _wrapped_v_kernel(x_ref, w1_ref, b1_ref, w2_ref, b2_ref, o_ref):
    # First layer:  [t, x] @ W1 + b1  ==  x @ W1[1:] + (t*W1[0] + b1)
    # (time already folded into b1 in the wrapper; weights may be block-diag
    #  replicas when the batch is packed lane-densely).
    h = jnp.dot(x_ref[...], w1_ref[...], preferred_element_type=jnp.float32)
    h = jnp.tanh(h + b1_ref[...])
    out = jnp.dot(h, w2_ref[...], preferred_element_type=jnp.float32) + b2_ref[...]
    o_ref[...] = out.astype(o_ref.dtype)


def _default_batch_tile(B, pack):
    """Largest convenient batch tile: multiple of 8*pack sublanes, divides B,
    keeps the grid > 1 when the batch is big enough to pipeline."""
    step = 8 * pack
    if B <= step:
        return B
    cap = min(max(step, B // 4), 2048)      # aim for >= 4 grid steps, <= 2048 rows
    bt = (cap // step) * step
    while bt >= step:
        if B % bt == 0:
            return bt
        bt -= step
    return B                                 # fallback: single full-batch tile


def input_wrapper_forward(x, t, params, *, batch_tile=None):
    """Pallas implementation of InputWrapper(v).forward(x, t)."""
    B, D = x.shape
    w1, b1, w2, b2 = params                  # w1: (D+1,H)  b1: (H,)  w2: (H,D)  b2: (D,)
    H = w1.shape[1]

    # ---- fold the time term into the first-layer bias (grid-constant) ----
    t = jnp.asarray(t, jnp.float32)
    b1_eff = t * w1[0, :] + b1               # (H,)
    w1x = w1[1:, :]                          # (D, H)

    # ---- lane-dense packing of the batch dim -----------------------------
    pack = 1
    if D < 128 and 128 % D == 0 and B % (128 // D) == 0:
        pack = 128 // D

    if pack > 1:
        eyep = jnp.eye(pack, dtype=x.dtype)
        # Block-diagonal weights reproduce the per-row matmuls in packed layout.
        w1p = jnp.einsum("pq,dh->pdqh", eyep, w1x).reshape(pack * D, pack * H)
        w2p = jnp.einsum("pq,hd->phqd", eyep, w2).reshape(pack * H, pack * D)
        b1p = jnp.tile(b1_eff, pack).reshape(1, pack * H)
        b2p = jnp.tile(b2, pack).reshape(1, pack * D)
        xp = x.reshape(B // pack, pack * D)  # free row-major reshape
    else:
        w1p, w2p = w1x, w2
        b1p, b2p = b1_eff.reshape(1, H), b2.reshape(1, D)
        xp = x

    Bp, Dp = xp.shape
    Hp = w1p.shape[1]

    if batch_tile is None:
        batch_tile = _default_batch_tile(B, pack)
    assert B % batch_tile == 0, "batch_tile must divide B"
    assert batch_tile % pack == 0, "batch_tile must be a multiple of the lane pack"
    bt_p = batch_tile // pack                # packed rows per grid step
    assert bt_p % 8 == 0 or bt_p == Bp, "packed batch tile must be a multiple of 8"

    grid = (Bp // bt_p,)
    out_p = pl.pallas_call(
        _wrapped_v_kernel,
        out_shape=jax.ShapeDtypeStruct((Bp, Dp), x.dtype),
        grid_spec=pltpu.PrefetchScalarGridSpec(
            num_scalar_prefetch=0,
            grid=grid,
            in_specs=[
                pl.BlockSpec((bt_p, Dp), lambda i: (i, 0)),   # packed x tile
                pl.BlockSpec((Dp, Hp), lambda i: (0, 0)),     # W1 (block-diag)
                pl.BlockSpec((1, Hp), lambda i: (0, 0)),      # b1_eff (tiled)
                pl.BlockSpec((Hp, Dp), lambda i: (0, 0)),     # W2 (block-diag)
                pl.BlockSpec((1, Dp), lambda i: (0, 0)),      # b2 (tiled)
            ],
            out_specs=pl.BlockSpec((bt_p, Dp), lambda i: (i, 0)),
        ),
        compiler_params=pltpu.CompilerParams(
            dimension_semantics=("parallel",)),   # batch axis -> megacore shard on v7x
    )(xp, w1p, b1p, w2p, b2p)

    return out_p.reshape(B, D)               # free row-major reshape back


def reference_forward(x, t, params):
    """Pure-JAX reference mirroring the PyTorch forward exactly."""
    w1, b1, w2, b2 = params
    B = x.shape[0]
    t_col = jnp.broadcast_to(jnp.reshape(t, (1, 1)), (B, 1)).astype(x.dtype)
    tx = jnp.concatenate([t_col, x], axis=1)                  # (B, D+1)
    h = jnp.tanh(tx @ w1 + b1)
    return h @ w2 + b2


def init_params(key, D, H):
    """Deterministic init for v = Linear(D+1,H) -> tanh -> Linear(H,D)."""
    k1, k2, k3, k4 = jax.random.split(key, 4)
    s1 = 1.0 / jnp.sqrt(D + 1.0)
    s2 = 1.0 / jnp.sqrt(float(H))
    w1 = jax.random.uniform(k1, (D + 1, H), jnp.float32, -s1, s1)
    b1 = jax.random.uniform(k2, (H,), jnp.float32, -s1, s1)
    w2 = jax.random.uniform(k3, (H, D), jnp.float32, -s2, s2)
    b2 = jax.random.uniform(k4, (D,), jnp.float32, -s2, s2)
    return (w1, b1, w2, b2)


if __name__ == "__main__":
    key = jax.random.PRNGKey(0)
    kx, kt, kp = jax.random.split(key, 3)

    # Small but tile-able shapes: pack=4 (D=32 -> 128 lanes), batch_tile=128,
    # grid of 4 steps so the pipeline / megacore path is actually exercised.
    B, D, H = 512, 32, 64
    x = jax.random.normal(kx, (B, D), dtype=jnp.float32)
    t = jax.random.uniform(kt, (), dtype=jnp.float32)         # scalar time
    params = init_params(kp, D, H)

    out = input_wrapper_forward(x, t, params)
    out = jax.block_until_ready(out)

    ref = reference_forward(x, t, params)
    assert out.shape == (B, D)
    assert jnp.allclose(out, ref, atol=2e-5, rtol=2e-5), "mismatch vs reference"
    print("KERNEL_OK")
</pallas_src>

<mosaic_0001>
module attributes {stable_mosaic.version = 11 : i64} {
  func.func @_wrapped_v_kernel(%arg0: i32, %arg1: memref<32x128xf32, #tpu.memory_space<vmem>>, %arg2: memref<128x256xf32, #tpu.memory_space<vmem>>, %arg3: memref<1x256xf32, #tpu.memory_space<vmem>>, %arg4: memref<256x128xf32, #tpu.memory_space<vmem>>, %arg5: memref<1x128xf32, #tpu.memory_space<vmem>>, %arg6: memref<32x128xf32, #tpu.memory_space<vmem>>) attributes {dimension_semantics = [#tpu.dimension_semantics<parallel>], iteration_bounds = array<i64: 4>, scalar_prefetch = 0 : i64, scratch_operands = 0 : i64, tpu.core_type = #tpu.core_type<tc>, window_params = [{transform_indices = @transform_0, window_bounds = array<i64: 32, 128>}, {pipeline_mode = #tpu.pipeline_mode<synchronous>, transform_indices = @transform_1, window_bounds = array<i64: 128, 256>}, {pipeline_mode = #tpu.pipeline_mode<synchronous>, transform_indices = @transform_2, window_bounds = array<i64: 1, 256>}, {pipeline_mode = #tpu.pipeline_mode<synchronous>, transform_indices = @transform_3, window_bounds = array<i64: 256, 128>}, {pipeline_mode = #tpu.pipeline_mode<synchronous>, transform_indices = @transform_4, window_bounds = array<i64: 1, 128>}, {transform_indices = @transform_5, window_bounds = array<i64: 32, 128>}]} {
    %c0 = arith.constant 0 : index
    %c0_0 = arith.constant 0 : index
    %0 = vector.load %arg1[%c0, %c0_0] : memref<32x128xf32, #tpu.memory_space<vmem>>, vector<32x128xf32>
    %c0_1 = arith.constant 0 : index
    %c0_2 = arith.constant 0 : index
    %1 = vector.load %arg2[%c0_1, %c0_2] : memref<128x256xf32, #tpu.memory_space<vmem>>, vector<128x256xf32>
    %cst = arith.constant dense<0.000000e+00> : vector<32x256xf32>
    %2 = tpu.matmul %0, %1, %cst {dimension_numbers = #tpu.dot_dimension_numbers<[1], [0], [0], [1], [0, 0, 1, 1], [], []>} : vector<32x128xf32>, vector<128x256xf32>, vector<32x256xf32> -> vector<32x256xf32>
    %c0_3 = arith.constant 0 : index
    %c0_4 = arith.constant 0 : index
    %3 = vector.load %arg3[%c0_3, %c0_4] : memref<1x256xf32, #tpu.memory_space<vmem>>, vector<1x256xf32>
    %4 = vector.broadcast %3 : vector<1x256xf32> to vector<32x256xf32>
    %5 = arith.addf %2, %4 : vector<32x256xf32>
    %6 = math.tanh %5 : vector<32x256xf32>
    %c0_5 = arith.constant 0 : index
    %c0_6 = arith.constant 0 : index
    %7 = vector.load %arg4[%c0_5, %c0_6] : memref<256x128xf32, #tpu.memory_space<vmem>>, vector<256x128xf32>
    %cst_7 = arith.constant dense<0.000000e+00> : vector<32x128xf32>
    %8 = tpu.matmul %6, %7, %cst_7 {dimension_numbers = #tpu.dot_dimension_numbers<[1], [0], [0], [1], [0, 0, 1, 1], [], []>} : vector<32x256xf32>, vector<256x128xf32>, vector<32x128xf32> -> vector<32x128xf32>
    %c0_8 = arith.constant 0 : index
    %c0_9 = arith.constant 0 : index
    %9 = vector.load %arg5[%c0_8, %c0_9] : memref<1x128xf32, #tpu.memory_space<vmem>>, vector<1x128xf32>
    %10 = vector.broadcast %9 : vector<1x128xf32> to vector<32x128xf32>
    %11 = arith.addf %8, %10 : vector<32x128xf32>
    %c0_10 = arith.constant 0 : index
    %c0_11 = arith.constant 0 : index
    %12 = vector.load %arg6[%c0_10, %c0_11] : memref<32x128xf32, #tpu.memory_space<vmem>>, vector<32x128xf32>
    tpu.vector_store %arg6[%c0_10, %c0_11], %11 {strides = array<i32>} : memref<32x128xf32, #tpu.memory_space<vmem>>, vector<32x128xf32>,
    return
  }
  func.func @transform_0(%arg0: i32) -> (i32, i32) {
    %c0_i32 = arith.constant 0 : i32
    %c0_i32_0 = arith.constant 0 : i32
    return %arg0, %c0_i32 : i32, i32
  }
  func.func @transform_1(%arg0: i32) -> (i32, i32) {
    %c0_i32 = arith.constant 0 : i32
    %c0_i32_0 = arith.constant 0 : i32
    %c0_i32_1 = arith.constant 0 : i32
    return %c0_i32, %c0_i32_0 : i32, i32
  }
  func.func @transform_2(%arg0: i32) -> (i32, i32) {
    %c0_i32 = arith.constant 0 : i32
    %c0_i32_0 = arith.constant 0 : i32
    %c0_i32_1 = arith.constant 0 : i32
    return %c0_i32, %c0_i32_0 : i32, i32
  }
  func.func @transform_3(%arg0: i32) -> (i32, i32) {
    %c0_i32 = arith.constant 0 : i32
    %c0_i32_0 = arith.constant 0 : i32
    %c0_i32_1 = arith.constant 0 : i32
    return %c0_i32, %c0_i32_0 : i32, i32
  }
  func.func @transform_4(%arg0: i32) -> (i32, i32) {
    %c0_i32 = arith.constant 0 : i32
    %c0_i32_0 = arith.constant 0 : i32
    %c0_i32_1 = arith.constant 0 : i32
    return %c0_i32, %c0_i32_0 : i32, i32
  }
  func.func @transform_5(%arg0: i32) -> (i32, i32) {
    %c0_i32 = arith.constant 0 : i32
    %c0_i32_0 = arith.constant 0 : i32
    return %arg0, %c0_i32 : i32, i32
  }
}

</mosaic_0001>

<bundles_post_ra>
// kernel: tpu_custom_call.1
= control target key start
LH: loop header
LB: loop body
LE: loop exit
PB: predicated region body
PF: predicated region fallthrough
CT: control target
= control target key end

     0   :  { %10 = vsyncpa [#allocation3], 0  ;;  %s1211_s0 = inlined_call_operand.hbm [shape: f32[128,128], index: 0, kind: input, shape index: {}]   ;;  %s1212_s1 = inlined_call_operand.hbm [shape: f32[128,256], index: 1, kind: input, shape index: {}]   ;;  %s1213_s2 = inlined_call_operand.vmem [shape: f32[1,256], index: 2, kind: input, shape index: {}]   ;;  %s1214_s3 = inlined_call_operand.hbm [shape: f32[256,128], index: 3, kind: input, shape index: {}]   ;;  %s1215_s4 = inlined_call_operand.vmem [shape: f32[1,128], index: 4, kind: input, shape index: {}]   ;;  %s1216_s5 = inlined_call_operand.hbm [shape: f32[128,128], index: 5, kind: output, shape index: {}]  }
   0x1   :  { %12 = vsyncpa [#allocation3 + $0x1], 0 }
   0x2   :  { %13 = vsyncpa [#allocation6], 0 }
   0x3   :  { %14 = vsyncpa [#allocation4], 0 }
   0x4   :  { %16 = vsyncpa [#allocation4 + $0x1], 0  ;;  %s999_s18 = smov 0   ;;  %s1001_s19 = smov 0  }
   0x5   :  { %s1003_s20 = smov 0   ;;  %s1005_s21 = smov 0  }
   0x6 LB: > { %s1020_s22 = sadd.s32 4294967295, %s956_s21   ;;  %s653_s23 = sadd.s32 4294967294, %s956_s21   ;;  %s956_s21 = sphi %s1005_s21, %s1239_s21   ;;  %s952_s20 = sphi %s1003_s20, %s1238_s20   ;;  %s948_s19 = sphi %s1001_s19, %s1237_s19   ;;  %s944_s18 = sphi %s999_s18, %s1236_s18  }
   0x7   : > { %p42_p0 = scmp.ne.s32.totalorder %s948_s19, %s944_s18  ;;  %p1217_p1 = scmp.eq.s32.totalorder %s1020_s22, 0 }
   0x8   : > { %p156_p3 = scmp.eq.s32.totalorder %s653_s23, 3  ;;  %p654_p5 = scmp.ge.s32.totalorder %s956_s21, 1 }
   0x9   : > { %p1029_p4 = por %p1217_p1, %p42_p0  ;;  %p163_p7 = scmp.lt.s32.totalorder %s956_s21, 5 }
   0xa   : > { %p1034_p6 = por %p156_p3, %p42_p0  ;;  %s958_s27 = smov [#allocation5]  }
   0xb   : > { %s1222_s24 = scalar_select %p1029_p4, 1, 0 }
   0xc   : > { %s1223_s25 = scalar_select %p1034_p6, 1, 0 }
   0xd   : > { %p1039_p8 = pnand %p654_p5, %p163_p7  ;;  %s175_s28 = sshll.u32 %s958_s27, 4  ;;  %s176_s28 = int_to_ptr.vmem [resolvable:$true] %s175_s28 }
   0xe   : > { %s959_s30 = smov [#allocation7]   ;;  %s819_s7 = scalar_lea.vmem %s176_s28, 4096 }
   0xf   : > { %s1224_s26 = scalar_select %p1039_p8, 1, 0 }
  0x10   : > { %p730_p9 = pneg %p1039_p8  ;;  %s191_s6 = sshll.u32 %s959_s30, 4  ;;  %s192_s6 = int_to_ptr.vmem [resolvable:$true] %s191_s6 }
  0x11   : > { %p820_p12 = scmp.ne.s32.totalorder %s176_s28, %s819_s7  ;;  %p827_p3 = scmp.lt.s32.totalorder %s176_s28, %s176_s28 }
  0x12   : > { %p1047_p10 = pnand %p730_p9, %p1217_p1  ;;  %p828_p5 = scmp.lt.s32.totalorder %s819_s7, %s819_s7 }
  0x14   : > { %p810_p11 = pneg %p1047_p10  ;;  %p829_p7 = por %p828_p5, %p827_p3 }
  0x16   : > { %p822_p13 = pnand %p820_p12, %p810_p11 }
  0x18   : > { %p823_p0 = pneg %p822_p13 }
  0x1a   : > { %p830_p9 = pnand %p829_p7, %p823_p0 }
  0x1c   : > { %833 = shalt.err (!%p830_p9)
}
  0x1d   : > { %s960_s8 = smov 256   ;;  %s961_s9 = smov 16  }
  0x1e   : > { %733 = dma.hbm_to_vmem [thread:$0]  (!%p1047_p10), %s1212_s1, 4096, %s176_s28, [#allocation6], %s960_s8, %s960_s8, %s961_s9  }
  0x1f   : > { %s845_s12 = scalar_lea.vmem %s192_s6, 4096  ;;  %p853_p2 = scmp.lt.s32.totalorder %s192_s6, %s192_s6 }
  0x20   : > { %p846_p1 = scmp.ne.s32.totalorder %s192_s6, %s845_s12  ;;  %p854_p6 = scmp.lt.s32.totalorder %s845_s12, %s845_s12 }
  0x22   : > { %p848_p12 = pnand %p846_p1, %p810_p11  ;;  %p855_p3 = por %p854_p6, %p853_p2 }
  0x24   : > { %p849_p13 = pneg %p848_p12 }
  0x26   : > { %p856_p0 = pnand %p855_p3, %p849_p13 }
  0x28   : > { %859 = shalt.err (!%p856_p0)
}
  0x29   : > { %s1218_s13 = smov 128   ;;  %s963_s14 = smov 8  }
  0x2a   : > { %736 = dma.hbm_to_vmem [thread:$0]  (!%p1047_p10), %s1214_s3, 4096, %s192_s6, [#allocation6], %s1218_s13, %s1218_s13, %s963_s14  }
  0x2b   : > { %s1073_s17 = sadd.s32 1, %s956_s21   ;;  %s29_s27 = sadd.s32 1, %s952_s20 }
  0x2c   : > { %s26_s23 = ssub.s32 %s956_s21, %s1073_s17  ;;  %p36_p2 = scmp.ne.s32.totalorder %s952_s20, %s948_s19 }
  0x2d   : > { %p27_p1 = scmp.eq.s32.totalorder %s26_s23, 0  ;;  %p37_p6 = scmp.eq.s32.totalorder %s956_s21, 0 }
  0x2e   : > { %p1226_p5 = scmp.eq.s32.totalorder %s1020_s22, 3  ;;  %p747_p9 = scmp.lt.s32.totalorder %s956_s21, 4 }
  0x2f   : > { %s1082_s28 = scalar_select %p27_p1, %s952_s20, %s29_s27  }
  0x30   : > { %p38_p11 = por %p37_p6, %p36_p2  ;;  %p1086_p7 = por %p1226_p5, %p36_p2 }
  0x31   : > { %s208_s30 = sand.u32 1, %s952_s20   ;;  %s672_s6 = sshll.u32 %s956_s21, 9 }
  0x32   : > { %s1227_s29 = scalar_select %p1086_p7, 1, 0 }
  0x33   : > { %s658_s7 = sshll.u32 %s208_s30, 5  ;;  %s1096_s10 = scalar_lea.hbm %s1211_s0, %s672_s6 }
  0x34   : > { %s212_s11 = scalar_lea.vmem [#allocation2], %s658_s7  ;;  %p1100_p10 = pnand %p747_p9, %p38_p11 }
  0x35   : > { %s219_s12 = sshll.u32 %s212_s11, 4  ;;  %s1104_s16 = scalar_lea.sflag [#allocation3], %s208_s30  ;;  %s1098_s12 = int_to_ptr.vmem [resolvable:$true] %s219_s12 }
  0x36   : > { %s860_s23 = scalar_lea.hbm %s1096_s10, 512  ;;  %p862_p13 = pneg %p1100_p10 }
  0x37   : > { %p861_p12 = scmp.ne.s32.totalorder %s1096_s10, %s860_s23  ;;  %s865_s7 = scalar_lea.hbm %s1211_s0, 2048 }
  0x38   : > { %p866_p1 = scmp.lt.s32.totalorder %s1096_s10, %s1211_s0  ;;  %p867_p2 = scmp.lt.s32.totalorder %s865_s7, %s860_s23 }
  0x39   : > { %p863_p3 = pnand %p862_p13, %p861_p12 }
  0x3a   : > { %p868_p6 = por %p867_p2, %p866_p1 }
  0x3b   : > { %p864_p0 = pneg %p863_p3 }
  0x3d   : > { %p869_p11 = pnand %p868_p6, %p864_p0 }
  0x3f   : > { %872 = shalt.err (!%p869_p11)
}
  0x40   : > { %s873_s30 = scalar_lea.vmem %s1098_s12, 512  ;;  %s964_s11 = smov [#allocation2]  }
  0x41   : > { %p874_p5 = scmp.ne.s32.totalorder %s1098_s12, %s873_s30  ;;  %s878_s13 = sshll.u32 %s964_s11, 4  ;;  %s879_s13 = int_to_ptr.vmem [resolvable:$false] %s878_s13 }
  0x42   : > { %s880_s27 = scalar_lea.vmem %s879_s13, 1024  ;;  %p881_p3 = scmp.lt.s32.totalorder %s1098_s12, %s879_s13 }
  0x43   : > { %p876_p9 = pnand %p874_p5, %p862_p13  ;;  %p882_p7 = scmp.lt.s32.totalorder %s880_s27, %s873_s30 }
  0x45   : > { %p877_p12 = pneg %p876_p9  ;;  %p883_p4 = por %p882_p7, %p881_p3 }
  0x47   : > { %p884_p8 = pnand %p883_p4, %p877_p12 }
  0x49   : > { %887 = shalt.err (!%p884_p8)
}
  0x4a   : > { %s1229_s23 = smov 128   ;;  %p1230_p13 = scmp.ne.s32.totalorder %s1224_s26, 0 }
  0x4b   : > { %740 = dma.hbm_to_vmem [thread:$0]  (!%p1100_p10), %s1096_s10, 512, %s1098_s12, %s1104_s16, %s1229_s23, %s1229_s23, %s963_s14  }
  0x4c   : > { %231 = sbr.rel (%p1230_p13) target bundleno = 555 (0x22b), region = 40  ;;  %s1131_s6 = sand.u32 (!%p1230_p13), 1, %s948_s19  }
  0x4d   : > { %s662_s13 = sshll.u32 (!%p1230_p13), %s1131_s6, 5  ;;  %s234_s7 = scalar_lea.sflag (!%p1230_p13), [#allocation3], %s1131_s6 }
  0x4e   : > { %s1137_s15 = scalar_lea.vmem (!%p1230_p13), [#allocation2], %s662_s13  ;;  %p1231_p4 = scmp.ne.s32.totalorder (!%p1230_p13), %s1222_s24, 0 }
  0x51   : > { %931 = dma.done.wait (%p1231_p4), %s234_s7, 512  }
  0x52   : > { %933 = vsyncadd (%p1231_p4), %s234_s7, 4294966784  ;;  %p1232_p8 = scmp.eq.s32.totalorder %s1020_s22, 0 }
  0x54   : > { %935 = dma.done.wait (%p1232_p8), [#allocation6], 8192   ;;  %p1233_p7 = pmov %p1232_p8 }
  0x55   : > { %v965_v0 = vmov 0.0   ;;  %v309_v1 = vld [vmem:[#allocation5 + $0xf8] sm:$0xff]  ;;  %v308_v2 = vld [vmem:[#allocation5 + $0xf0] sm:$0xff]  ;;  %v307_v3 = vld [vmem:[#allocation5 + $0xe8] sm:$0xff]  ;;  %s271_s12 = scalar_lea.vmem [#allocation8], %s662_s13  ;;  %s673_s8 = sshll.u32 %s1020_s22, 9 }
  0x56   : > { %937 = vsyncadd (%p1233_p7), [#allocation6], 4294959104  ;;  %386 = vmatprep.mubr.f32.mxu0 %v965_v0  ;;  %322 = vmatprep.subr.mxu0 %v309_v1  ;;  %v306_v4 = vld [vmem:[#allocation5 + $0xe0] sm:$0xff]  ;;  %v305_v5 = vld [vmem:[#allocation5 + $0xd8] sm:$0xff]  ;;  %s561_s16 = sshll.u32 %s271_s12, 4  ;;  %s1169_s11 = scalar_lea.hbm %s1216_s5, %s673_s8  ;;  %s1164_s16 = int_to_ptr.vmem [resolvable:$true] %s561_s16 }
  0x57   : > { %323 = vmatpush1.msra.mxu0 %v308_v2  ;;  %v304_v6 = vld [vmem:[#allocation5 + $0xd0] sm:$0xff]  ;;  %v303_v7 = vld [vmem:[#allocation5 + $0xc8] sm:$0xff]  ;;  %v302_v8 = vld [vmem:[#allocation5 + $0xc0] sm:$0xff]  ;;  %s548_s27 = scalar_lea.sflag [#allocation4], %s1131_s6  ;;  %s888_s23 = scalar_lea.vmem %s1164_s16, 512 }
  0x58   : > { %324 = vmatprep.subr.mxu0 %v307_v3  ;;  %v301_v9 = vld [vmem:[#allocation5 + $0xb8] sm:$0xff]  ;;  %v300_v10 = vld [vmem:[#allocation5 + $0xb0] sm:$0xff]  ;;  %v299_v11 = vld [vmem:[#allocation5 + $0xa8] sm:$0xff]  ;;  %p889_p10 = scmp.ne.s32.totalorder %s1164_s16, %s888_s23  ;;  %p1234_p0 = scmp.ne.s32.totalorder %s1227_s29, 0 }
  0x59   : > { %325 = vmatpush1.msra.mxu0 %v306_v4  ;;  %v298_v12 = vld [vmem:[#allocation5 + $0xa0] sm:$0xff]  ;;  %v297_v13 = vld [vmem:[#allocation5 + $0x98] sm:$0xff]  ;;  %v296_v14 = vld [vmem:[#allocation5 + $0x90] sm:$0xff]  ;;  %s966_s22 = smov [#allocation8]  }
  0x5a   : > { %326 = vmatprep.subr.mxu0 %v305_v5  ;;  %v295_v15 = vld [vmem:[#allocation5 + $0x88] sm:$0xff]  ;;  %v450_v16 = vld [vmem:[#allocation7 + $0xf8] sm:$0xff]  ;;  %v449_v18 = vld [vmem:[#allocation7 + $0xf0] sm:$0xff]  ;;  %v312_v5 = vlaneseq  ;;  %p890_p1 = pnand %p889_p10, %p1234_p0  ;;  %s892_s13 = sshll.u32 %s966_s22, 4  ;;  %s893_s13 = int_to_ptr.vmem [resolvable:$false] %s892_s13 }
  0x5b   : > { %327 = vmatpush1.msra.mxu0 %v304_v6  ;;  %v434_v17 = vld [vmem:[#allocation7 + $0x78] sm:$0xff]  ;;  %v294_v19 = vld [vmem:[#allocation5 + $0x80] sm:$0xff]  ;;  %674 = vmatprep.subr.mxu1 %v450_v16  ;;  %v433_v20 = vld [vmem:[#allocation7 + $0x70] sm:$0xff]  ;;  %s894_s7 = scalar_lea.vmem %s893_s13, 1024  ;;  %p895_p6 = scmp.lt.s32.totalorder %s1164_s16, %s893_s13 }
  0x5c   : > { %328 = vmatprep.subr.mxu0 %v303_v7  ;;  %v293_v21 = vld [vmem:[#allocation5 + $0x78] sm:$0xff]  ;;  %675 = vmatpush3.msra.mxu1 %v434_v17  ;;  %v448_v22 = vld [vmem:[#allocation7 + $0xe8] sm:$0xff]  ;;  %v292_v23 = vld [vmem:[#allocation5 + $0x70] sm:$0xff]  ;;  %v313_v6 = vshrl.u32 %v312_v5, 7  ;;  %p891_p2 = pneg %p890_p1  ;;  %p896_p11 = scmp.lt.s32.totalorder %s894_s7, %s888_s23 }
  0x5d   : > { %329 = vmatpush1.msra.mxu0 %v302_v8  ;;  %676 = vmatprep.subr.mxu1 %v449_v18  ;;  %v432_v24 = vld [vmem:[#allocation7 + $0x68] sm:$0xff]  ;;  %v447_v26 = vld [vmem:[#allocation7 + $0xe0] sm:$0xff]  ;;  %v289_v29 = vld [vmem:[#allocation5 + $0x58] sm:$0xff] }
  0x5e   : > { %330 = vmatprep.subr.mxu0 %v301_v9  ;;  %v291_v25 = vld [vmem:[#allocation5 + $0x68] sm:$0xff]  ;;  %677 = vmatpush3.msra.mxu1 %v433_v20  ;;  %v290_v27 = vld [vmem:[#allocation5 + $0x60] sm:$0xff]  ;;  %v446_v30 = vld [vmem:[#allocation7 + $0xd8] sm:$0xff]  ;;  %v314_v7 = vsub.s32 0, %v313_v6  ;;  %v318_v9 = vsub.s32 1, %v313_v6  ;;  %p897_p5 = por %p896_p11, %p895_p6 }
  0x5f   : > { %331 = vmatpush1.msra.mxu0 %v300_v10  ;;  %678 = vmatprep.subr.mxu1 %v448_v22  ;;  %v431_v28 = vld [vmem:[#allocation7 + $0x60] sm:$0xff]  ;;  %v288_v31 = vld [vmem:[#allocation5 + $0x50] sm:$0xff]  ;;  %v430_v32 = vld [vmem:[#allocation7 + $0x58] sm:$0xff] }
  0x60   : > { %332 = vmatprep.subr.mxu0 %v299_v11  ;;  %679 = vmatpush3.msra.mxu1 %v432_v24  ;;  %v287_v33 = vld [vmem:[#allocation5 + $0x48] sm:$0xff]  ;;  %v445_v34 = vld [vmem:[#allocation7 + $0xd0] sm:$0xff]  ;;  %v286_v35 = vld [vmem:[#allocation5 + $0x40] sm:$0xff]  ;;  %p898_p9 = pnand %p897_p5, %p891_p2 }
  0x61   : > { %333 = vmatpush1.msra.mxu0 %v298_v12  ;;  %680 = vmatprep.subr.mxu1 %v447_v26  ;;  %v429_v36 = vld [vmem:[#allocation7 + $0x50] sm:$0xff]  ;;  %v285_v37 = vld [vmem:[#allocation5 + $0x38] sm:$0xff]  ;;  %v283_v39 = vld [vmem:[#allocation5 + $0x28] sm:$0xff] }
  0x62   : > { %334 = vmatprep.subr.mxu0 %v297_v13  ;;  %681 = vmatpush3.msra.mxu1 %v431_v28  ;;  %v284_v38 = vld [vmem:[#allocation5 + $0x30] sm:$0xff]  ;;  %v282_v40 = vld [vmem:[#allocation5 + $0x20] sm:$0xff]  ;;  %v281_v41 = vld [vmem:[#allocation5 + $0x18] sm:$0xff] }
  0x63   : > { %335 = vmatpush1.msra.mxu0 %v296_v14  ;;  %682 = vmatprep.subr.mxu1 %v446_v30  ;;  %v280_v42 = vld [vmem:[#allocation5 + $0x10] sm:$0xff]  ;;  %v279_v43 = vld [vmem:[#allocation5 + $0x8] sm:$0xff]  ;;  %v278_v44 = vld [vmem:[#allocation5] sm:$0xff] }
  0x64   : > { %336 = vmatprep.subr.mxu0 %v295_v15  ;;  %683 = vmatpush3.msra.mxu1 %v430_v32  ;;  %v274_v45 = vld [vmem:[%s1137_s15] sm:$0xff]  ;;  %v275_v46 = vld [vmem:[%s1137_s15 + $0x8] sm:$0xff]  ;;  %v276_v47 = vld [vmem:[%s1137_s15 + $0x10] sm:$0xff] }
  0x65   : > { %337 = vmatpush1.msra.mxu0 %v294_v19  ;;  %684 = vmatprep.subr.mxu1 %v445_v34  ;;  %v277_v48 = vld [vmem:[%s1137_s15 + $0x18] sm:$0xff]  ;;  %v444_v49 = vld [vmem:[#allocation7 + $0xc8] sm:$0xff]  ;;  %v443_v51 = vld [vmem:[#allocation7 + $0xc0] sm:$0xff] }
  0x66   : > { %338 = vmatprep.subr.mxu0 %v293_v21  ;;  %685 = vmatpush3.msra.mxu1 %v429_v36  ;;  %v428_v50 = vld [vmem:[#allocation7 + $0x48] sm:$0xff]  ;;  %v427_v52 = vld [vmem:[#allocation7 + $0x40] sm:$0xff]  ;;  %v442_v53 = vld [vmem:[#allocation7 + $0xb8] sm:$0xff] }
  0x67   : > { %339 = vmatpush1.msra.mxu0 %v292_v23  ;;  %686 = vmatprep.subr.mxu1 %v444_v49  ;;  %v426_v54 = vld [vmem:[#allocation7 + $0x38] sm:$0xff]  ;;  %v441_v55 = vld [vmem:[#allocation7 + $0xb0] sm:$0xff]  ;;  %v440_v57 = vld [vmem:[#allocation7 + $0xa8] sm:$0xff] }
  0x68   : > { %340 = vmatprep.subr.mxu0 %v291_v25  ;;  %687 = vmatpush3.msra.mxu1 %v428_v50  ;;  %v425_v56 = vld [vmem:[#allocation7 + $0x30] sm:$0xff]  ;;  %v424_v58 = vld [vmem:[#allocation7 + $0x28] sm:$0xff]  ;;  %v439_v59 = vld [vmem:[#allocation7 + $0xa0] sm:$0xff] }
  0x69   : > { %341 = vmatpush1.msra.mxu0 %v290_v27  ;;  %688 = vmatprep.subr.mxu1 %v443_v51  ;;  %v423_v60 = vld [vmem:[#allocation7 + $0x20] sm:$0xff]  ;;  %v438_v61 = vld [vmem:[#allocation7 + $0x98] sm:$0xff]  ;;  %v437_v63 = vld [vmem:[#allocation7 + $0x90] sm:$0xff] }
  0x6a   : > { %342 = vmatprep.subr.mxu0 %v289_v29  ;;  %689 = vmatpush3.msra.mxu1 %v427_v52  ;;  %v422_v62 = vld [vmem:[#allocation7 + $0x18] sm:$0xff]  ;;  %v436_v1 = vld [vmem:[#allocation7 + $0x88] sm:$0xff]  ;;  %v435_v3 = vld [vmem:[#allocation7 + $0x80] sm:$0xff] }
  0x6b   : > { %343 = vmatpush1.msra.mxu0 %v288_v31  ;;  %690 = vmatprep.subr.mxu1 %v442_v53  ;;  %v420_v2 = vld [vmem:[#allocation7 + $0x8] sm:$0xff]  ;;  %v419_v4 = vld [vmem:[#allocation7] sm:$0xff] }
  0x6c   : > { %344 = vmatprep.subr.mxu0 %v287_v33  ;;  %691 = vmatpush3.msra.mxu1 %v426_v54  ;;  %v310_v8 = vld [vmem:[%s1213_s2] sm:$0x3] }
  0x6d   : > { %345 = vmatpush1.msra.mxu0 %v286_v35  ;;  %692 = vmatprep.subr.mxu1 %v441_v55  ;;  %v315_v10 = vrot.slane %v310_v8, %v314_v7  ;;  %v319_v11 = vrot.slane %v310_v8, %v318_v9 }
  0x6e   : > { %346 = vmatprep.subr.mxu0 %v285_v37  ;;  %693 = vmatpush3.msra.mxu1 %v425_v56  ;;  %v666_v37 = vld [vmem:[%s1215_s4] ss:$0 sm:$0xff] }
  0x6f   : > { %347 = vmatpush1.msra.mxu0 %v284_v38  ;;  %694 = vmatprep.subr.mxu1 %v440_v57 }
  0x70   : > { %348 = vmatprep.subr.mxu0 %v283_v39  ;;  %695 = vmatpush3.msra.mxu1 %v424_v58 }
  0x71   : > { %349 = vmatpush1.msra.mxu0 %v282_v40  ;;  %696 = vmatprep.subr.mxu1 %v439_v59 }
  0x72   : > { %350 = vmatprep.subr.mxu0 %v281_v41  ;;  %697 = vmatpush3.msra.mxu1 %v423_v60 }
  0x73   : > { %351 = vmatpush1.msra.mxu0 %v280_v42  ;;  %698 = vmatprep.subr.mxu1 %v438_v61 }
  0x74   : > { %352 = vmatprep.subr.mxu0 %v279_v43  ;;  %699 = vmatpush3.msra.mxu1 %v422_v62 }
  0x75   : > { %353 = vmatpush1.msra.mxu0 %v278_v44  ;;  %700 = vmatprep.subr.mxu1 %v437_v63 }
  0x76   : > { %387 = vmatmul.mubr.f32.vlgmr.msra.gmra.mxu0 %v274_v45 }
  0x77   : > { %392 = vmatprep.mubr.f32.mxu0 %v965_v0 }
  0x7a   : > { %393 = vmatmul.mubr.f32.gmra.mxu0 %v275_v46 }
  0x7b   : > { %398 = vmatprep.mubr.f32.mxu0 %v965_v0 }
  0x7e   : > { %399 = vmatmul.mubr.f32.gmra.mxu0 %v276_v47 }
  0x7f   : > { %404 = vmatprep.mubr.f32.mxu0 %v965_v0  ;;  %v421_v0 = vld [vmem:[#allocation7 + $0x10] sm:$0xff] }
  0x80   : > { %701 = vmatpush3.msra.mxu1 %v421_v0 }
  0x81   : > { %702 = vmatprep.subr.mxu1 %v436_v1 }
  0x82   : > { %405 = vmatmul.mubr.f32.gmra.mxu0 %v277_v48  ;;  %703 = vmatpush3.msra.mxu1 %v420_v2 }
  0x83   : > { %704 = vmatprep.subr.mxu1 %v435_v3 }
  0x84   : > { %705 = vmatpush3.msra.mxu1 %v419_v4 }
 0x136   : > { %v388_v12 = vpop.f32.mrf.mxu0 }
 0x137   : > { %v389_v13 = vadd.f32 %v388_v12, %v315_v10 }
 0x138   : > { %v390_v14 = vpop.f32.mrf.mxu0 }
 0x139   : > { %v391_v15 = vadd.f32 %v390_v14, %v319_v11 }
 0x13a   : > { %v394_v16 = vpop.f32.mrf.mxu0 }
 0x13b   : > { %792 = vtanh.f32 %v391_v15  ;;  %v395_v17 = vadd.f32 %v394_v16, %v315_v10 }
 0x13c   : > { %794 = vtanh.f32 %v389_v13  ;;  %v396_v18 = vpop.f32.mrf.mxu0 }
 0x13d   : > { %v397_v19 = vadd.f32 %v396_v18, %v319_v11 }
 0x13e   : > { %v400_v20 = vpop.f32.mrf.mxu0 }
 0x13f   : > { %796 = vtanh.f32 %v397_v19  ;;  %v401_v21 = vadd.f32 %v400_v20, %v315_v10 }
 0x140   : > { %798 = vtanh.f32 %v395_v17  ;;  %v402_v22 = vpop.f32.mrf.mxu0 }
 0x141   : > { %v403_v23 = vadd.f32 %v402_v22, %v319_v11 }
 0x142   : > { %v406_v24 = vpop.f32.mrf.mxu0 }
 0x143   : > { %800 = vtanh.f32 %v403_v23  ;;  %v407_v25 = vadd.f32 %v406_v24, %v315_v10 }
 0x144   : > { %802 = vtanh.f32 %v401_v21  ;;  %v408_v26 = vpop.f32.mrf.mxu0 }
 0x145   : > { %v409_v27 = vadd.f32 %v408_v26, %v319_v11 }
 0x147   : > { %804 = vtanh.f32 %v409_v27 }
 0x148   : > { %v793_v28 = vpop.eup %792  ;;  %806 = vtanh.f32 %v407_v25 }
 0x149   : > { %v795_v29 = vpop.eup %794  ;;  %522 = vmatprep.mubr.f32.mxu1 %v793_v28 }
 0x14a   : > { %523 = vmatmul.mubr.f32.vlgmr.msra.gmra.mxu1 %v795_v29 }
 0x14c   : > { %v797_v30 = vpop.eup %796 }
 0x14d   : > { %v799_v31 = vpop.eup %798  ;;  %527 = vmatprep.mubr.f32.mxu1 %v797_v30 }
 0x14e   : > { %528 = vmatmul.mubr.f32.gmra.mxu1 %v799_v31 }
 0x150   : > { %v801_v32 = vpop.eup %800 }
 0x151   : > { %v803_v33 = vpop.eup %802  ;;  %532 = vmatprep.mubr.f32.mxu1 %v801_v32 }
 0x152   : > { %533 = vmatmul.mubr.f32.gmra.mxu1 %v803_v33 }
 0x154   : > { %v805_v34 = vpop.eup %804 }
 0x155   : > { %v807_v35 = vpop.eup %806  ;;  %537 = vmatprep.mubr.f32.mxu1 %v805_v34 }
 0x156   : > { %538 = vmatmul.mubr.f32.gmra.mxu1 %v807_v35 }
 0x20a   : > { %v706_v36 = vpop.f32.mrf.mxu1 }
 0x20c   : > { %v707_v38 = vpop.f32.mrf.mxu1 }
 0x20d   : > { %v708_v39 = vadd.f32 %v707_v38, %v706_v36 }
 0x20e   : > { %v709_v40 = vpop.f32.mrf.mxu1 }
 0x20f   : > { %v525_v41 = vadd.f32 %v708_v39, %v666_v37 }
 0x210   : > { %v710_v42 = vpop.f32.mrf.mxu1 }
 0x211   : > { %543 = vst [vmem:[%s271_s12] sm:$0xff] %v525_v41  ;;  %v711_v43 = vadd.f32 %v710_v42, %v709_v40 }
 0x212   : > { %v712_v44 = vpop.f32.mrf.mxu1 }
 0x213   : > { %v530_v45 = vadd.f32 %v711_v43, %v666_v37 }
 0x214   : > { %v713_v46 = vpop.f32.mrf.mxu1 }
 0x215   : > { %544 = vst [vmem:[%s271_s12 + $0x8] sm:$0xff] %v530_v45  ;;  %v714_v47 = vadd.f32 %v713_v46, %v712_v44 }
 0x216   : > { %v715_v48 = vpop.f32.mrf.mxu1 }
 0x217   : > { %v535_v49 = vadd.f32 %v714_v47, %v666_v37 }
 0x218   : > { %v716_v50 = vpop.f32.mrf.mxu1 }
 0x219   : > { %545 = vst [vmem:[%s271_s12 + $0x10] sm:$0xff] %v535_v49  ;;  %v717_v51 = vadd.f32 %v716_v50, %v715_v48 }
 0x21b   : > { %v540_v52 = vadd.f32 %v717_v51, %v666_v37 }
 0x21d   : > { %546 = vst [vmem:[%s271_s12 + $0x18] sm:$0xff] %v540_v52 }
 0x21e   : > { %901 = shalt.err (!%p898_p9)
}
 0x21f   : > { %s902_s15 = scalar_lea.hbm %s1169_s11, 512  ;;  %s906_s14 = scalar_lea.hbm %s1216_s5, 2048 }
 0x220   : > { %p903_p12 = scmp.ne.s32.totalorder %s1169_s11, %s902_s15  ;;  %p907_p4 = scmp.lt.s32.totalorder %s1169_s11, %s1216_s5 }
 0x221   : > { %p908_p8 = scmp.lt.s32.totalorder %s906_s14, %s902_s15 }
 0x222   : > { %p904_p3 = pnand %p903_p12, %p1234_p0 }
 0x223   : > { %p909_p7 = por %p908_p8, %p907_p4 }
 0x224   : > { %p905_p13 = pneg %p904_p3 }
 0x226   : > { %p910_p10 = pnand %p909_p7, %p905_p13 }
 0x228   : > { %913 = shalt.err (!%p910_p10)
}
 0x229   : > { %s967_s8 = smov 128   ;;  %s968_s9 = smov 8  }
 0x22a   : > { %728 = dma.vmem_to_hbm [thread:$0]  (%p1234_p0), %s1164_s16, 512, %s1169_s11, %s548_s27, %s967_s8, %s967_s8, %s968_s9  }
 0x22b PF: > { %p750_p1 = scmp.ge.s32.totalorder %s956_s21, 2  ;;  %s576_s30 = sand.u32 1, %s944_s18  }
 0x22c   : > { %p1235_p2 = scmp.ne.s32.totalorder %s1223_s25, 0  ;;  %s577_s23 = scalar_lea.sflag [#allocation4], %s576_s30 }
 0x22e   : > { %p742_p6 = pnand %p750_p1, %p1235_p2 }
 0x230   : > { %p743_p11 = pneg %p742_p6 }
 0x232   : > { %939 = dma.done.wait (%p743_p11), %s577_s23, 512  }
 0x233   : > { %941 = vsyncadd (%p743_p11), %s577_s23, 4294966784  ;;  %p19_p5 = scmp.ge.s32.totalorder %s1073_s17, 6   ;;  %s1236_s18 = smov %s948_s19 }
 0x234   : > { %s1237_s19 = smov %s952_s20  ;;  %s1238_s20 = smov %s1082_s28 }
 0x235   : > { %s1239_s21 = smov %s1073_s17  ;;  %21 = sbr.rel (!%p19_p5) target bundleno = 6 (0x6), region = 93 }
 0x23a   :  { %582 = vsyncpa [#allocation3], 1 }
 0x23b   :  { %584 = vsyncpa [#allocation3 + $0x1], 1 }
 0x23c   :  { %585 = vsyncpa [#allocation6], 1 }
 0x23d   :  { %586 = vsyncpa [#allocation4], 1 }
 0x23e   :  { %588 = vsyncpa [#allocation4 + $0x1], 1 }

</bundles_post_ra>
